<compile_context>
chip_gen: v7x
topology: tpu7x:2x2x1
jax: 0.10.0
libtpu: 0.0.40
codegen_flags: <defaults>
</compile_context>

<pallas_src>
import math
from functools import partial

import jax
import jax.numpy as jnp
from jax import lax
from jax.experimental import pallas as pl
from jax.experimental.pallas import tpu as pltpu


# ------------------------------ helpers ------------------------------

def _pick_tile(dim, pref, align):
    """Largest tile <= pref that is a multiple of `align` and divides `dim`.
    Falls back to the full dim when dim is not a multiple of align (only hit by
    the small test lane dims / SAM's N=196; production lane dims are 128-multiples)."""
    if dim % align != 0:
        return dim
    t = min(pref, dim)
    t = max((t // align) * align, align)
    while dim % t != 0:
        t -= align
    return t


def _vmem_budget(working_set_bytes):
    """Explicit scoped-VMEM budget: double-buffered working set + headroom,
    floored at the 32 MiB default. (bf16 operands + query blocking keep the
    real working sets well under v7x's 64 MiB physical VMEM.)"""
    return int(min(max(working_set_bytes + (4 << 20), 32 << 20), 100 << 20))


# ----------------------------- tiled linear -----------------------------

def _linear_kernel(x_ref, w_ref, b_ref, o_ref, acc_ref):
    @pl.when(pl.program_id(2) == 0)
    def _():
        acc_ref[...] = jnp.zeros_like(acc_ref)

    acc_ref[...] += jnp.dot(x_ref[...], w_ref[...],
                            preferred_element_type=jnp.float32)

    @pl.when(pl.program_id(2) == pl.num_programs(2) - 1)
    def _():
        o_ref[...] = (acc_ref[...] +
                      b_ref[...].astype(jnp.float32)).astype(o_ref.dtype)


def pallas_linear(x2d, w_t, b, *, out_dtype=jnp.float32,
                  tm_pref=512, tn_pref=512, tk_pref=512):
    """y = x2d @ w_t + b.  bf16 MXU operands, f32 accumulation, tiled & pipelined.
    On v6e (128 MiB VMEM) tn_pref/tk_pref can be raised toward 1024; keep 512 on
    v7x (64 MiB) unless profiling shows exposed DMA."""
    M0, Kin = x2d.shape
    Kout = w_t.shape[1]

    x2d = x2d.astype(jnp.bfloat16)
    w_t = w_t.astype(jnp.bfloat16)
    b2 = b.reshape(1, Kout).astype(jnp.float32)

    # bf16 packs two rows per sublane -> align the sublane-facing M dim to 16
    # (pad in glue instead of falling back to a whole-dimension block).
    m_align = 16
    M = ((M0 + m_align - 1) // m_align) * m_align
    if M != M0:
        x2d = jnp.pad(x2d, ((0, M - M0), (0, 0)))

    tm = _pick_tile(M, tm_pref, m_align)
    tn = _pick_tile(Kout, tn_pref, 128)
    tk = _pick_tile(Kin, tk_pref, 128)

    out_bytes = jnp.dtype(out_dtype).itemsize
    vmem = _vmem_budget(2 * (tm * tk + tk * tn) * 2 + 2 * tn * 4
                        + 2 * tm * tn * out_bytes + tm * tn * 4)
    cost = pl.CostEstimate(
        flops=int(2 * M * Kin * Kout),
        transcendentals=0,
        bytes_accessed=int((M * Kin + Kin * Kout) * 2 + M * Kout * out_bytes
                           + Kout * 4),
    )

    y = pl.pallas_call(
        _linear_kernel,
        out_shape=jax.ShapeDtypeStruct((M, Kout), out_dtype),
        grid_spec=pltpu.PrefetchScalarGridSpec(
            num_scalar_prefetch=0,
            grid=(M // tm, Kout // tn, Kin // tk),
            in_specs=[
                pl.BlockSpec((tm, tk), lambda i, j, k: (i, k)),
                pl.BlockSpec((tk, tn), lambda i, j, k: (k, j)),
                pl.BlockSpec((1, tn), lambda i, j, k: (0, j)),
            ],
            out_specs=pl.BlockSpec((tm, tn), lambda i, j, k: (i, j)),
            scratch_shapes=[pltpu.VMEM((tm, tn), jnp.float32)],
        ),
        compiler_params=pltpu.CompilerParams(
            dimension_semantics=("parallel", "parallel", "arbitrary"),
            vmem_limit_bytes=vmem),
        cost_estimate=cost,
    )(x2d, w_t, b2)
    return y[:M0] if M != M0 else y


# --------------------------- fused attention ----------------------------

def _attn_kernel(q_ref, k_ref, v_ref, rel_ref, e_ref, o_ref, *, scale):
    q = q_ref[0, 0]                                   # (tq, hd) bf16
    k = k_ref[0, 0]                                   # (N,  hd) bf16
    v = v_ref[0, 0]                                   # (N,  hd) bf16

    # scale q (tq*hd VPU work) rather than scaling the (tq, N) scores.
    q = (q.astype(jnp.float32) * scale).astype(k.dtype)

    # scores on the MXU with bf16 operands, f32 accumulation (contract last dims).
    s = lax.dot_general(q, k, (((1,), (1,)), ((), ())),
                        preferred_element_type=jnp.float32)        # (tq, N)

    # decomposed rel-pos bias: ONE one-hot expansion matmul per step.
    s += jnp.dot(rel_ref[0, 0], e_ref[...],
                 preferred_element_type=jnp.float32)               # (tq, N)

    # softmax over keys; stats kept in f32.
    s -= jnp.max(s, axis=-1, keepdims=True)
    p = jnp.exp(s)
    denom = jnp.sum(p, axis=-1, keepdims=True)

    # PV matmul first, normalize after: tq*hd multiplies instead of tq*N.
    out = jnp.dot(p.astype(v.dtype), v,
                  preferred_element_type=jnp.float32)              # (tq, hd)
    out *= pl.reciprocal(denom, approx=False)
    o_ref[0, 0] = out.astype(o_ref.dtype)


def pallas_attention(q_h, k_h, v_h, rel_hw, e_hw, *, scale, tq_pref=512):
    """q_h/k_h/v_h: (B, nh, N, hd) bf16; rel_hw: (B, nh, N, H+W) bf16; e_hw: (H+W, N)."""
    B, nh, N, hd = q_h.shape
    HW = e_hw.shape[0]
    tq = _pick_tile(N, tq_pref, 8)
    nq = N // tq

    vmem = _vmem_budget(
        2 * (tq * hd + 2 * N * hd + tq * HW) * 2   # q/k/v/rel blocks, double-buffered
        + 2 * HW * N * 2                           # one-hot constants (resident)
        + 2 * tq * hd * 2                          # output block
        + 3 * tq * N * 4)                          # f32 score / exp temporaries

    cost = pl.CostEstimate(
        flops=int(2 * B * nh * N * N * (2 * hd + HW)),
        transcendentals=int(B * nh * N * N),
        bytes_accessed=int((q_h.size + k_h.size + v_h.size + rel_hw.size
                            + e_hw.size + B * nh * N * hd) * 2),
    )

    kernel = partial(_attn_kernel, scale=scale)
    return pl.pallas_call(
        kernel,
        out_shape=jax.ShapeDtypeStruct((B, nh, N, hd), jnp.bfloat16),
        grid_spec=pltpu.PrefetchScalarGridSpec(
            num_scalar_prefetch=0,
            grid=(B, nh, nq),
            in_specs=[
                pl.BlockSpec((1, 1, tq, hd), lambda b, h, i: (b, h, i, 0)),
                # k/v stay resident across the query-block axis (constant index).
                pl.BlockSpec((1, 1, N, hd), lambda b, h, i: (b, h, 0, 0)),
                pl.BlockSpec((1, 1, N, hd), lambda b, h, i: (b, h, 0, 0)),
                pl.BlockSpec((1, 1, tq, HW), lambda b, h, i: (b, h, i, 0)),
                pl.BlockSpec((HW, N), lambda b, h, i: (0, 0)),   # constant -> resident
            ],
            out_specs=pl.BlockSpec((1, 1, tq, hd), lambda b, h, i: (b, h, i, 0)),
        ),
        compiler_params=pltpu.CompilerParams(
            dimension_semantics=("parallel", "parallel", "parallel"),
            vmem_limit_bytes=vmem),
        cost_estimate=cost,
    )(q_h, k_h, v_h, rel_hw, e_hw)


# ------------------- output projection (head re-pack fused) -------------------

def _proj_kernel(o_ref, w_ref, b_ref, y_ref, acc_ref):
    @pl.when(pl.program_id(2) == 0)
    def _():
        acc_ref[...] = jnp.zeros_like(acc_ref)

    acc_ref[...] += jnp.dot(o_ref[0, 0], w_ref[0],
                            preferred_element_type=jnp.float32)

    @pl.when(pl.program_id(2) == pl.num_programs(2) - 1)
    def _():
        y_ref[0] = (acc_ref[...] +
                    b_ref[...].astype(jnp.float32)).astype(y_ref.dtype)


def pallas_proj(o_heads, w_proj, b, *, out_dtype, tq_pref=512):
    """y[b,n,:] = sum_h o_heads[b,h,n,:] @ w_proj[h] + b  -- absorbs the head
    re-pack into the matmul's reduction axis (no (B,nh,N,hd)->(B,N,C) transpose)."""
    B, nh, N, hd = o_heads.shape
    C = w_proj.shape[-1]
    tq = _pick_tile(N, tq_pref, 8)
    nq = N // tq
    b2 = b.reshape(1, C).astype(jnp.float32)
    out_bytes = jnp.dtype(out_dtype).itemsize

    vmem = _vmem_budget(2 * (tq * hd + hd * C) * 2 + 2 * C * 4
                        + 2 * tq * C * out_bytes + tq * C * 4)
    cost = pl.CostEstimate(
        flops=int(2 * B * N * nh * hd * C),
        transcendentals=0,
        bytes_accessed=int((o_heads.size + w_proj.size) * 2
                           + B * N * C * out_bytes + C * 4),
    )

    return pl.pallas_call(
        _proj_kernel,
        out_shape=jax.ShapeDtypeStruct((B, N, C), out_dtype),
        grid_spec=pltpu.PrefetchScalarGridSpec(
            num_scalar_prefetch=0,
            grid=(B, nq, nh),
            in_specs=[
                pl.BlockSpec((1, 1, tq, hd), lambda b, i, h: (b, h, i, 0)),
                pl.BlockSpec((1, hd, C), lambda b, i, h: (h, 0, 0)),
                pl.BlockSpec((1, C), lambda b, i, h: (0, 0)),
            ],
            out_specs=pl.BlockSpec((1, tq, C), lambda b, i, h: (b, i, 0)),
            scratch_shapes=[pltpu.VMEM((tq, C), jnp.float32)],
        ),
        compiler_params=pltpu.CompilerParams(
            dimension_semantics=("parallel", "parallel", "arbitrary"),
            vmem_limit_bytes=vmem),
        cost_estimate=cost,
    )(o_heads, w_proj, b2)


# ------------------------------- glue JAX -------------------------------

def get_rel_pos_jax(q_size, k_size, rel_pos):
    max_rel_dist = 2 * max(q_size, k_size) - 1
    # TODO(synk): the linear-interpolation resize branch of get_rel_pos is skipped;
    # tables here have exactly max_rel_dist rows (q_size == k_size for SAM windows).
    assert rel_pos.shape[0] == max_rel_dist
    q_coords = jnp.arange(q_size)[:, None] * max(k_size / q_size, 1.0)
    k_coords = jnp.arange(k_size)[None, :] * max(q_size / k_size, 1.0)
    rel = q_coords - k_coords + (k_size - 1) * max(q_size / k_size, 1.0)
    return rel_pos[rel.astype(jnp.int32)]          # (q_size, k_size, head_dim)


def attention_forward(x, params, num_heads):
    B, H, W, C = x.shape
    hd = C // num_heads
    scale = hd ** -0.5
    N = H * W

    # 1) qkv projection (tiled, bf16 MXU operands, f32 accumulation & output).
    x2d = x.reshape(B * N, C)
    qkv = pallas_linear(x2d, params["w_qkv_t"], params["b_qkv"])   # (B*N, 3C) f32
    qkv = qkv.reshape(B, N, 3, num_heads, hd)

    # 2) decomposed rel-pos: gather tables, contract unscaled q in f32 (glue),
    #    concatenate H/W parts so the kernel does ONE one-hot expansion matmul.
    Rh = get_rel_pos_jax(H, H, params["rel_pos_h"])                 # (H, H, hd)
    Rw = get_rel_pos_jax(W, W, params["rel_pos_w"])                 # (W, W, hd)
    q_g = qkv[:, :, 0].reshape(B, H, W, num_heads, hd)              # unscaled q
    rel_h = jnp.einsum("bhwnc,hkc->bnhwk", q_g, Rh).reshape(B, num_heads, N, H)
    rel_w = jnp.einsum("bhwnc,wkc->bnhwk", q_g, Rw).reshape(B, num_heads, N, W)
    rel_hw = jnp.concatenate([rel_h, rel_w], axis=-1).astype(jnp.bfloat16)

    # one-hot expansion constants (exact in bf16): key column m -> kh=m//W, kw=m%W.
    cols = jnp.arange(N)
    eh = (cols[None, :] // W == jnp.arange(H)[:, None])
    ew = (cols[None, :] % W == jnp.arange(W)[:, None])
    e_hw = jnp.concatenate([eh, ew], axis=0).astype(jnp.bfloat16)   # (H+W, N)

    # head-major bf16 layout: hd is the full last dim -> no lane-crossing slices.
    qkv_heads = jnp.transpose(qkv, (2, 0, 3, 1, 4)).astype(jnp.bfloat16)  # (3,B,nh,N,hd)
    q_h, k_h, v_h = qkv_heads[0], qkv_heads[1], qkv_heads[2]

    # 3) fused attention, one (batch, head, q-block) per grid step.
    o_heads = pallas_attention(q_h, k_h, v_h, rel_hw, e_hw, scale=scale)  # (B,nh,N,hd)

    # 4) output projection; head re-pack folded into the reduction axis.
    w_proj = params["w_proj_t"].reshape(num_heads, hd, C).astype(jnp.bfloat16)
    y = pallas_proj(o_heads, w_proj, params["b_proj"], out_dtype=x.dtype)  # (B, N, C)
    return y.reshape(B, H, W, C)


def reference_forward(x, params, num_heads):
    """Pure-JAX f32 reference mirroring the PyTorch forward exactly."""
    B, H, W, C = x.shape
    hd = C // num_heads
    scale = hd ** -0.5
    N = H * W
    qkv = x.reshape(B, N, C) @ params["w_qkv_t"] + params["b_qkv"]
    qkv = qkv.reshape(B, N, 3, num_heads, hd).transpose(2, 0, 3, 1, 4)
    qkv = qkv.reshape(3, B * num_heads, N, hd)
    q, k, v = qkv[0], qkv[1], qkv[2]
    attn = (q * scale) @ jnp.swapaxes(k, -2, -1)
    Rh = get_rel_pos_jax(H, H, params["rel_pos_h"])
    Rw = get_rel_pos_jax(W, W, params["rel_pos_w"])
    rq = q.reshape(-1, H, W, hd)
    rel_h = jnp.einsum("bhwc,hkc->bhwk", rq, Rh)
    rel_w = jnp.einsum("bhwc,wkc->bhwk", rq, Rw)
    attn = (attn.reshape(-1, H, W, H, W)
            + rel_h[:, :, :, :, None] + rel_w[:, :, :, None, :]).reshape(-1, N, N)
    attn = jax.nn.softmax(attn, axis=-1)
    o = (attn @ v).reshape(B, num_heads, H, W, hd).transpose(0, 2, 3, 1, 4)
    o = o.reshape(B * N, C) @ params["w_proj_t"] + params["b_proj"]
    return o.reshape(B, H, W, C)


# --------------------------------- main ---------------------------------

if __name__ == "__main__":
    B, H, W, C = 2, 8, 8, 32
    num_heads = 4
    hd = C // num_heads

    key = jax.random.PRNGKey(0)
    ks = jax.random.split(key, 7)
    x = jax.random.normal(ks[0], (B, H, W, C), jnp.float32)
    params = {
        # weights stored pre-transposed as (in, out) -- parameter-layout glue.
        "w_qkv_t": jax.random.normal(ks[1], (C, 3 * C), jnp.float32) / math.sqrt(C),
        "b_qkv":   jax.random.normal(ks[2], (3 * C,), jnp.float32) * 0.02,
        "w_proj_t": jax.random.normal(ks[3], (C, C), jnp.float32) / math.sqrt(C),
        "b_proj":  jax.random.normal(ks[4], (C,), jnp.float32) * 0.02,
        # module zero-inits these (rel_pos_zero_init=True); small random values
        # are used so the relative-position path is actually exercised.
        "rel_pos_h": jax.random.normal(ks[5], (2 * H - 1, hd), jnp.float32) * 0.1,
        "rel_pos_w": jax.random.normal(ks[6], (2 * W - 1, hd), jnp.float32) * 0.1,
    }

    out = attention_forward(x, params, num_heads)
    out = jax.block_until_ready(out)

    ref = reference_forward(x, params, num_heads)
    # tolerance accounts for bf16 MXU operands (accumulators & softmax stats are f32).
    if not jnp.allclose(out, ref, atol=5e-2, rtol=5e-2):
        raise AssertionError(
            f"mismatch vs reference: max abs err {jnp.max(jnp.abs(out - ref))}")
    print("KERNEL_OK")
</pallas_src>

<mosaic_0001>
module attributes {stable_mosaic.version = 11 : i64} {
  func.func @_linear_kernel(%arg0: i32, %arg1: i32, %arg2: i32, %arg3: memref<128x32xbf16, #tpu.memory_space<vmem>>, %arg4: memref<32x96xbf16, #tpu.memory_space<vmem>>, %arg5: memref<1x96xf32, #tpu.memory_space<vmem>>, %arg6: memref<128x96xf32, #tpu.memory_space<vmem>>, %arg7: memref<128x96xf32, #tpu.memory_space<vmem>>) attributes {dimension_semantics = [#tpu.dimension_semantics<parallel>, #tpu.dimension_semantics<parallel>, #tpu.dimension_semantics<arbitrary>], iteration_bounds = array<i64: 1, 1, 1>, scalar_prefetch = 0 : i64, scratch_operands = 1 : i64, tpu.core_type = #tpu.core_type<tc>, window_params = [{transform_indices = @transform_0, window_bounds = array<i64: 128, 32>}, {transform_indices = @transform_1, window_bounds = array<i64: 32, 96>}, {transform_indices = @transform_2, window_bounds = array<i64: 1, 96>}, {transform_indices = @transform_3, window_bounds = array<i64: 128, 96>}]} {
    %c0_i32 = arith.constant 0 : i32
    %0 = arith.cmpi eq, %arg2, %c0_i32 : i32
    %1 = arith.extui %0 : i1 to i32
    %c0_i32_0 = arith.constant 0 : i32
    %2 = arith.cmpi ne, %1, %c0_i32_0 : i32
    scf.if %2 {
      %cst_10 = arith.constant 0.000000e+00 : f32
      %12 = vector.broadcast %cst_10 : f32 to vector<128x96xf32>
      %c0_11 = arith.constant 0 : index
      %c0_12 = arith.constant 0 : index
      %13 = vector.load %arg7[%c0_11, %c0_12] : memref<128x96xf32, #tpu.memory_space<vmem>>, vector<128x96xf32>
      tpu.vector_store %arg7[%c0_11, %c0_12], %12 {strides = array<i32>} : memref<128x96xf32, #tpu.memory_space<vmem>>, vector<128x96xf32>,
    } else {
    }
    %c0 = arith.constant 0 : index
    %c0_1 = arith.constant 0 : index
    %3 = vector.load %arg7[%c0, %c0_1] : memref<128x96xf32, #tpu.memory_space<vmem>>, vector<128x96xf32>
    %c0_2 = arith.constant 0 : index
    %c0_3 = arith.constant 0 : index
    %4 = vector.load %arg3[%c0_2, %c0_3] : memref<128x32xbf16, #tpu.memory_space<vmem>>, vector<128x32xbf16>
    %c0_4 = arith.constant 0 : index
    %c0_5 = arith.constant 0 : index
    %5 = vector.load %arg4[%c0_4, %c0_5] : memref<32x96xbf16, #tpu.memory_space<vmem>>, vector<32x96xbf16>
    %cst = arith.constant dense<0.000000e+00> : vector<128x96xf32>
    %6 = tpu.matmul %4, %5, %cst {dimension_numbers = #tpu.dot_dimension_numbers<[1], [0], [0], [1], [0, 0, 1, 1], [], []>} : vector<128x32xbf16>, vector<32x96xbf16>, vector<128x96xf32> -> vector<128x96xf32>
    %7 = arith.addf %3, %6 : vector<128x96xf32>
    %c0_6 = arith.constant 0 : index
    %c0_7 = arith.constant 0 : index
    %8 = vector.load %arg7[%c0_6, %c0_7] : memref<128x96xf32, #tpu.memory_space<vmem>>, vector<128x96xf32>
    tpu.vector_store %arg7[%c0_6, %c0_7], %7 {strides = array<i32>} : memref<128x96xf32, #tpu.memory_space<vmem>>, vector<128x96xf32>,
    %c0_i32_8 = arith.constant 0 : i32
    %9 = arith.cmpi eq, %arg2, %c0_i32_8 : i32
    %10 = arith.extui %9 : i1 to i32
    %c0_i32_9 = arith.constant 0 : i32
    %11 = arith.cmpi ne, %10, %c0_i32_9 : i32
    scf.if %11 {
      %c0_10 = arith.constant 0 : index
      %c0_11 = arith.constant 0 : index
      %12 = vector.load %arg7[%c0_10, %c0_11] : memref<128x96xf32, #tpu.memory_space<vmem>>, vector<128x96xf32>
      %c0_12 = arith.constant 0 : index
      %c0_13 = arith.constant 0 : index
      %13 = vector.load %arg5[%c0_12, %c0_13] : memref<1x96xf32, #tpu.memory_space<vmem>>, vector<1x96xf32>
      %14 = vector.broadcast %13 : vector<1x96xf32> to vector<128x96xf32>
      %15 = arith.addf %12, %14 : vector<128x96xf32>
      %c0_14 = arith.constant 0 : index
      %c0_15 = arith.constant 0 : index
      %16 = vector.load %arg6[%c0_14, %c0_15] : memref<128x96xf32, #tpu.memory_space<vmem>>, vector<128x96xf32>
      tpu.vector_store %arg6[%c0_14, %c0_15], %15 {strides = array<i32>} : memref<128x96xf32, #tpu.memory_space<vmem>>, vector<128x96xf32>,
    } else {
    }
    return
  }
  func.func @transform_0(%arg0: i32, %arg1: i32, %arg2: i32) -> (i32, i32) {
    %c0_i32 = arith.constant 0 : i32
    return %arg0, %arg2 : i32, i32
  }
  func.func @transform_1(%arg0: i32, %arg1: i32, %arg2: i32) -> (i32, i32) {
    %c0_i32 = arith.constant 0 : i32
    return %arg2, %arg1 : i32, i32
  }
  func.func @transform_2(%arg0: i32, %arg1: i32, %arg2: i32) -> (i32, i32) {
    %c0_i32 = arith.constant 0 : i32
    %c0_i32_0 = arith.constant 0 : i32
    return %c0_i32, %arg1 : i32, i32
  }
  func.func @transform_3(%arg0: i32, %arg1: i32, %arg2: i32) -> (i32, i32) {
    %c0_i32 = arith.constant 0 : i32
    return %arg0, %arg1 : i32, i32
  }
}

</mosaic_0001>

<bundles_post_ra>
// kernel: tpu_custom_call.1
= control target key start
LH: loop header
LB: loop body
LE: loop exit
PB: predicated region body
PF: predicated region fallthrough
CT: control target
= control target key end

     0   :  { %vm19_vm0 = vcmask 785408   ;;  %v405_v1 = vmov 0.0   ;;  %vm124_vm1 = vcmask 261120   ;;  %s581_s1 = inlined_call_operand.vmem [shape: bf16[32,96], index: 1, kind: input, shape index: {}]   ;;  %s582_s0 = inlined_call_operand.vmem [shape: bf16[128,32], index: 0, kind: input, shape index: {}]   ;;  %s583_s2 = inlined_call_operand.vmem [shape: f32[1,96], index: 2, kind: input, shape index: {}]   ;;  %s584_s3 = inlined_call_operand.vmem [shape: f32[128,96], index: 3, kind: output, shape index: {}]  }
   0x1   :  { %v395_v0 = vld [vmem:[%s581_s1] sm:$0xff]   ;;  %22 = vst.msk [vmem:[#allocation2 + $0x10] sm:$0xff] %vm19_vm0, %v405_v1  ;;  %20 = vst.msk [vmem:[#allocation2] sm:$0xff] %vm19_vm0, %v405_v1  ;;  %v396_v2 = vld [vmem:[%s581_s1 + $0x8] sm:$0xff]  }
   0x2   :  { %21 = vst.msk [vmem:[#allocation2 + $0x8] sm:$0xff] %vm19_vm0, %v405_v1  ;;  %23 = vst.msk [vmem:[#allocation2 + $0x18] sm:$0xff] %vm19_vm0, %v405_v1  ;;  %370 = vmatprep.subr.bf16.mxu0 %v395_v0  ;;  %390 = vmatprep.subr.bf16.mxu1 %v395_v0  ;;  %v397_v3 = vld [vmem:[%s582_s0] sm:$0xff]   ;;  %v399_v5 = vld [vmem:[%s582_s0 + $0x8] sm:$0xff]  }
   0x3   :  { %24 = vst.msk [vmem:[#allocation2 + $0x20] sm:$0xff] %vm19_vm0, %v405_v1  ;;  %25 = vst.msk [vmem:[#allocation2 + $0x28] sm:$0xff] %vm19_vm0, %v405_v1  ;;  %371 = vmatpush3.bf16.msra.mxu0 %v395_v0  ;;  %392 = vmatpush3.bf16.msra.mxu1 %v395_v0  ;;  %v398_v4 = vld [vmem:[%s582_s0 + $0x20] sm:$0xff]   ;;  %v400_v6 = vld [vmem:[%s582_s0 + $0x28] sm:$0xff]  }
   0x4   :  { %26 = vst.msk [vmem:[#allocation2 + $0x30] sm:$0xff] %vm19_vm0, %v405_v1  ;;  %27 = vst.msk [vmem:[#allocation2 + $0x38] sm:$0xff] %vm19_vm0, %v405_v1  ;;  %372 = vmatprep.subr.bf16.mxu0 %v396_v2  ;;  %391 = vmatprep.subr.bf16.mxu1 %v396_v2  ;;  %v401_v7 = vld [vmem:[%s582_s0 + $0x10] sm:$0xff]   ;;  %v403_v9 = vld [vmem:[%s582_s0 + $0x18] sm:$0xff]  }
   0x5   :  { %28 = vst.msk [vmem:[#allocation2 + $0x40] sm:$0xff] %vm19_vm0, %v405_v1  ;;  %29 = vst.msk [vmem:[#allocation2 + $0x48] sm:$0xff] %vm19_vm0, %v405_v1  ;;  %374 = vmatprep.mubr.msk.bf16.mxu0 %vm124_vm1, %v397_v3  ;;  %382 = vmatprep.mubr.msk.bf16.mxu1 %vm124_vm1, %v398_v4  ;;  %v402_v8 = vld [vmem:[%s582_s0 + $0x30] sm:$0xff]   ;;  %v404_v10 = vld [vmem:[%s582_s0 + $0x38] sm:$0xff]  }
   0x6   :  { %30 = vst.msk [vmem:[#allocation2 + $0x50] sm:$0xff] %vm19_vm0, %v405_v1  ;;  %31 = vst.msk [vmem:[#allocation2 + $0x58] sm:$0xff] %vm19_vm0, %v405_v1  ;;  %v491_v39 = vld [vmem:[%s583_s2] ss:$0 sm:$0xff] }
   0x7   :  { %32 = vst.msk [vmem:[#allocation2 + $0x60] sm:$0xff] %vm19_vm0, %v405_v1  ;;  %33 = vst.msk [vmem:[#allocation2 + $0x68] sm:$0xff] %vm19_vm0, %v405_v1  ;;  %373 = vmatpush3.bf16.msra.mxu0 %v396_v2  ;;  %393 = vmatpush3.bf16.msra.mxu1 %v396_v2 }
   0x8   :  { %34 = vst.msk [vmem:[#allocation2 + $0x70] sm:$0xff] %vm19_vm0, %v405_v1  ;;  %35 = vst.msk [vmem:[#allocation2 + $0x78] sm:$0xff] %vm19_vm0, %v405_v1  ;;  %v38_v11 = vld [vmem:[#allocation2 + $0x10] sm:$0xff]  ;;  %v36_v13 = vld [vmem:[#allocation2] sm:$0xff] }
   0x9   :  { %v39_v17 = vld [vmem:[#allocation2 + $0x18] sm:$0xff]  ;;  %v37_v23 = vld [vmem:[#allocation2 + $0x8] sm:$0xff] }
   0xa   :  { %375 = vmatmul.mubr.msk.bf16.vlgmr.msra.gmra.mrb[0].mxu0 %vm124_vm1, %v399_v5  ;;  %383 = vmatmul.mubr.msk.bf16.vlgmr.msra.gmra.mrb[0].mxu1 %vm124_vm1, %v400_v6  ;;  %v40_v37 = vld [vmem:[#allocation2 + $0x20] sm:$0xff]  ;;  %v41_v48 = vld [vmem:[#allocation2 + $0x28] sm:$0xff] }
   0xb   :  { %378 = vmatprep.mubr.msk.bf16.mxu0 %vm124_vm1, %v401_v7  ;;  %386 = vmatprep.mubr.msk.bf16.mxu1 %vm124_vm1, %v402_v8  ;;  %v42_v35 = vld [vmem:[#allocation2 + $0x30] sm:$0xff]  ;;  %v43_v42 = vld [vmem:[#allocation2 + $0x38] sm:$0xff] }
   0xc   :  { %v44_v14 = vld [vmem:[#allocation2 + $0x40] sm:$0xff]  ;;  %v45_v24 = vld [vmem:[#allocation2 + $0x48] sm:$0xff] }
   0xd   :  { %v46_v12 = vld [vmem:[#allocation2 + $0x50] sm:$0xff]  ;;  %v47_v18 = vld [vmem:[#allocation2 + $0x58] sm:$0xff] }
   0xe   :  { %v48_v38 = vld [vmem:[#allocation2 + $0x60] sm:$0xff]  ;;  %v49_v49 = vld [vmem:[#allocation2 + $0x68] sm:$0xff] }
   0xf   :  { %v50_v36 = vld [vmem:[#allocation2 + $0x70] sm:$0xff]  ;;  %v51_v43 = vld [vmem:[#allocation2 + $0x78] sm:$0xff] }
  0x12   :  { %379 = vmatmul.mubr.msk.bf16.gmra.mrb[4].mxu0 %vm124_vm1, %v403_v9  ;;  %387 = vmatmul.mubr.msk.bf16.gmra.mrb[4].mxu1 %vm124_vm1, %v404_v10 }
  0xdd   :  { %v376_v15 = vpop.f32.mrb[0].mxu0  ;;  %v384_v16 = vpop.f32.mrb[0].mxu1 }
  0xde   :  { %v248_v19 = vadd.f32 %v376_v15, %v38_v11  ;;  %v256_v20 = vadd.f32 %v384_v16, %v46_v12  ;;  %v183_v21 = vpop.f32.mrb[1].mxu0  ;;  %v215_v22 = vpop.f32.mrb[1].mxu1 }
  0xdf   :  { %v246_v25 = vadd.f32 %v183_v21, %v36_v13  ;;  %v254_v26 = vadd.f32 %v215_v22, %v44_v14  ;;  %v377_v27 = vpop.f32.mrb[2].mxu0  ;;  %v385_v28 = vpop.f32.mrb[2].mxu1 }
  0xe0   :  { %265 = vst.msk [vmem:[#allocation2 + $0x10] sm:$0xff] %vm19_vm0, %v248_v19  ;;  %273 = vst.msk [vmem:[#allocation2 + $0x50] sm:$0xff] %vm19_vm0, %v256_v20  ;;  %v249_v29 = vadd.f32 %v377_v27, %v39_v17  ;;  %v257_v30 = vadd.f32 %v385_v28, %v47_v18  ;;  %v186_v31 = vpop.f32.mrb[3].mxu0  ;;  %v218_v32 = vpop.f32.mrb[3].mxu1 }
  0xe1   :  { %263 = vst.msk [vmem:[#allocation2] sm:$0xff] %vm19_vm0, %v246_v25  ;;  %271 = vst.msk [vmem:[#allocation2 + $0x40] sm:$0xff] %vm19_vm0, %v254_v26  ;;  %v247_v33 = vadd.f32 %v186_v31, %v37_v23  ;;  %v255_v34 = vadd.f32 %v218_v32, %v45_v24 }
  0xe2   :  { %266 = vst.msk [vmem:[#allocation2 + $0x18] sm:$0xff] %vm19_vm0, %v249_v29  ;;  %274 = vst.msk [vmem:[#allocation2 + $0x58] sm:$0xff] %vm19_vm0, %v257_v30 }
  0xe3   :  { %264 = vst.msk [vmem:[#allocation2 + $0x8] sm:$0xff] %vm19_vm0, %v247_v33  ;;  %272 = vst.msk [vmem:[#allocation2 + $0x48] sm:$0xff] %vm19_vm0, %v255_v34 }
  0xe5   :  { %v380_v40 = vpop.f32.mrb[4].mxu0  ;;  %v388_v41 = vpop.f32.mrb[4].mxu1 }
  0xe6   :  { %v252_v44 = vadd.f32 %v380_v40, %v42_v35  ;;  %v260_v45 = vadd.f32 %v388_v41, %v50_v36  ;;  %v199_v46 = vpop.f32.mrb[5].mxu0  ;;  %v231_v47 = vpop.f32.mrb[5].mxu1 }
  0xe7   :  { %v284_v50 = vld [vmem:[#allocation2 + $0x10] sm:$0xff]  ;;  %v250_v52 = vadd.f32 %v199_v46, %v40_v37  ;;  %v258_v53 = vadd.f32 %v231_v47, %v48_v38  ;;  %v381_v54 = vpop.f32.mrb[6].mxu0  ;;  %v389_v55 = vpop.f32.mrb[6].mxu1 }
  0xe8   :  { %v292_v51 = vld [vmem:[#allocation2 + $0x50] sm:$0xff]  ;;  %v307_v56 = vadd.f32 %v491_v39, %v284_v50  ;;  %v282_v58 = vld [vmem:[#allocation2] sm:$0xff]  ;;  %269 = vst.msk [vmem:[#allocation2 + $0x30] sm:$0xff] %vm19_vm0, %v252_v44  ;;  %277 = vst.msk [vmem:[#allocation2 + $0x70] sm:$0xff] %vm19_vm0, %v260_v45  ;;  %v253_v60 = vadd.f32 %v381_v54, %v43_v42  ;;  %v261_v61 = vadd.f32 %v389_v55, %v51_v43  ;;  %v202_v62 = vpop.f32.mrb[7].mxu0  ;;  %v234_v63 = vpop.f32.mrb[7].mxu1 }
  0xe9   :  { %v315_v57 = vadd.f32 %v491_v39, %v292_v51  ;;  %v290_v59 = vld [vmem:[#allocation2 + $0x40] sm:$0xff]  ;;  %v305_v0 = vadd.f32 %v491_v39, %v282_v58  ;;  %v285_v2 = vld [vmem:[#allocation2 + $0x18] sm:$0xff]  ;;  %267 = vst.msk [vmem:[#allocation2 + $0x20] sm:$0xff] %vm19_vm0, %v250_v52  ;;  %275 = vst.msk [vmem:[#allocation2 + $0x60] sm:$0xff] %vm19_vm0, %v258_v53  ;;  %v251_v4 = vadd.f32 %v202_v62, %v41_v48 }
  0xea   :  { %v313_v1 = vadd.f32 %v491_v39, %v290_v59  ;;  %v293_v3 = vld [vmem:[#allocation2 + $0x58] sm:$0xff]  ;;  %v259_v5 = vadd.f32 %v234_v63, %v49_v49  ;;  %323 = vst.msk [vmem:[%s584_s3 + $0x10] sm:$0xff] %vm19_vm0, %v307_v56  ;;  %v308_v6 = vadd.f32 %v491_v39, %v285_v2  ;;  %v283_v8 = vld [vmem:[#allocation2 + $0x8] sm:$0xff]  ;;  %270 = vst.msk [vmem:[#allocation2 + $0x38] sm:$0xff] %vm19_vm0, %v253_v60 }
  0xeb   :  { %331 = vst.msk [vmem:[%s584_s3 + $0x50] sm:$0xff] %vm19_vm0, %v315_v57  ;;  %v316_v7 = vadd.f32 %v491_v39, %v293_v3  ;;  %v291_v9 = vld [vmem:[#allocation2 + $0x48] sm:$0xff]  ;;  %278 = vst.msk [vmem:[#allocation2 + $0x78] sm:$0xff] %vm19_vm0, %v261_v61  ;;  %v306_v10 = vadd.f32 %v491_v39, %v283_v8 }
  0xec   :  { %321 = vst.msk [vmem:[%s584_s3] sm:$0xff] %vm19_vm0, %v305_v0  ;;  %329 = vst.msk [vmem:[%s584_s3 + $0x40] sm:$0xff] %vm19_vm0, %v313_v1  ;;  %v314_v11 = vadd.f32 %v491_v39, %v291_v9 }
  0xed   :  { %268 = vst.msk [vmem:[#allocation2 + $0x28] sm:$0xff] %vm19_vm0, %v251_v4  ;;  %276 = vst.msk [vmem:[#allocation2 + $0x68] sm:$0xff] %vm19_vm0, %v259_v5 }
  0xee   :  { %324 = vst.msk [vmem:[%s584_s3 + $0x18] sm:$0xff] %vm19_vm0, %v308_v6  ;;  %332 = vst.msk [vmem:[%s584_s3 + $0x58] sm:$0xff] %vm19_vm0, %v316_v7 }
  0xef   :  { %322 = vst.msk [vmem:[%s584_s3 + $0x8] sm:$0xff] %vm19_vm0, %v306_v10  ;;  %330 = vst.msk [vmem:[%s584_s3 + $0x48] sm:$0xff] %vm19_vm0, %v314_v11  ;;  %v288_v12 = vld [vmem:[#allocation2 + $0x30] sm:$0xff] }
  0xf0   :  { %v296_v13 = vld [vmem:[#allocation2 + $0x70] sm:$0xff]  ;;  %v311_v14 = vadd.f32 %v491_v39, %v288_v12  ;;  %v286_v16 = vld [vmem:[#allocation2 + $0x20] sm:$0xff] }
  0xf1   :  { %v319_v15 = vadd.f32 %v491_v39, %v296_v13  ;;  %v294_v17 = vld [vmem:[#allocation2 + $0x60] sm:$0xff]  ;;  %v309_v18 = vadd.f32 %v491_v39, %v286_v16  ;;  %v289_v20 = vld [vmem:[#allocation2 + $0x38] sm:$0xff] }
  0xf2   :  { %v317_v19 = vadd.f32 %v491_v39, %v294_v17  ;;  %v297_v21 = vld [vmem:[#allocation2 + $0x78] sm:$0xff]  ;;  %327 = vst.msk [vmem:[%s584_s3 + $0x30] sm:$0xff] %vm19_vm0, %v311_v14  ;;  %v312_v22 = vadd.f32 %v491_v39, %v289_v20 }
  0xf3   :  { %335 = vst.msk [vmem:[%s584_s3 + $0x70] sm:$0xff] %vm19_vm0, %v319_v15  ;;  %v320_v23 = vadd.f32 %v491_v39, %v297_v21  ;;  %325 = vst.msk [vmem:[%s584_s3 + $0x20] sm:$0xff] %vm19_vm0, %v309_v18 }
  0xf4   :  { %v287_v24 = vld [vmem:[#allocation2 + $0x28] sm:$0xff]  ;;  %333 = vst.msk [vmem:[%s584_s3 + $0x60] sm:$0xff] %vm19_vm0, %v317_v19  ;;  %328 = vst.msk [vmem:[%s584_s3 + $0x38] sm:$0xff] %vm19_vm0, %v312_v22 }
  0xf5   :  { %v295_v25 = vld [vmem:[#allocation2 + $0x68] sm:$0xff]  ;;  %v310_v26 = vadd.f32 %v491_v39, %v287_v24  ;;  %336 = vst.msk [vmem:[%s584_s3 + $0x78] sm:$0xff] %vm19_vm0, %v320_v23 }
  0xf6   :  { %v318_v27 = vadd.f32 %v491_v39, %v295_v25 }
  0xf7   :  { %326 = vst.msk [vmem:[%s584_s3 + $0x28] sm:$0xff] %vm19_vm0, %v310_v26 }
  0xf8   :  { %334 = vst.msk [vmem:[%s584_s3 + $0x68] sm:$0xff] %vm19_vm0, %v318_v27 }

</bundles_post_ra>
